<compile_context>
chip_gen: v6e
topology: v6e:2x2x1
jax: 0.10.0
libtpu: 0.0.40
codegen_flags: <defaults>
</compile_context>

<pallas_src>
import jax
import jax.numpy as jnp
from jax.experimental import pallas as pl
from jax.experimental.pallas import tpu as pltpu

# "args" values consistent with the module: Linear(100, 4) applied along the
# N_DIM axis after pooling => N_DIMENSION must be 100.
N_DIMENSION = 100
SRC_INPUT_DIMENSION = 4
SUPERPIXEL_COUNT = 25
NUM_CLASSES = 4


# ---------------------------------------------------------------------------
# Single fused kernel: pool + folded (1x1 conv + BN + Linear) head
# ---------------------------------------------------------------------------
def _fused_forward_kernel(x_ref, wb_ref, o_ref):
    # x_ref : (B*C, HW) f32 slab (one sublane-dense vreg tile).
    # wb_ref: (C+1, F)  = [Wfold (C,F) ; bfold (1,F)]  folded params slab.
    # o_ref : (B, F).
    B, F = o_ref.shape
    C = wb_ref.shape[0] - 1

    # AdaptiveAvgPool2d((1,1)) commuted to the front of the (fully linear)
    # conv1x1 -> BN -> Linear chain (exact while CGConv is absent).  The block
    # is the full array extent, so the mean divisor / lane masking is exact.
    pooled = jnp.mean(x_ref[...], axis=-1, keepdims=True)          # (B*C, 1)

    wb = wb_ref[...]                                                # (C+1, F)
    bias = wb[C:C + 1, :]                                           # (1, F)

    # out[b, :] = sum_c pooled[b*C + c] * Wfold[c, :] + bfold
    # K = C = 4 -> static VPU broadcast-FMAs; no MXU involvement.
    for b in range(B):                                              # static, B = 2
        acc = bias
        for c in range(C):                                          # static, C = 4
            r = b * C + c
            acc = acc + pooled[r:r + 1, :] * wb[c:c + 1, :]         # (1, F)
        o_ref[b:b + 1, :] = acc


def fused_forward(x2, wb, batch):
    """x2: (B*C, HW) f32; wb: (C+1, F) folded params  ->  (B, F) f32."""
    num_classes = wb.shape[1]
    return pl.pallas_call(
        _fused_forward_kernel,
        out_shape=jax.ShapeDtypeStruct((batch, num_classes), jnp.float32),
        # No grid: working set is a couple of vregs, so skip the grid loop and
        # double-buffer scaffolding; map every operand wholesale into VMEM.
        in_specs=[
            pl.BlockSpec(memory_space=pltpu.MemorySpace.VMEM),
            pl.BlockSpec(memory_space=pltpu.MemorySpace.VMEM),
        ],
        out_specs=pl.BlockSpec(memory_space=pltpu.MemorySpace.VMEM),
    )(x2, wb)


# ---------------------------------------------------------------------------
# Network forward (domain='source')
# ---------------------------------------------------------------------------
def network_forward(kparams, data, subgraphs):
    # data: (B, SRC, H, W), subgraphs: (B, SRC, L)
    B, C, H, W = data.shape
    # (B, C, H, W) -> (B*C, H*W): contiguous reshape, no transpose / HBM copy.
    x2 = data.reshape(B * C, H * W)

    # TODO(synk): CGConvBlock (self.mixconvList[0..2]) is not defined in the
    # provided reference source, so the three mixed-conv blocks cannot be
    # translated.  The graph branch (source_graph_mapping(subgraphs)) feeds
    # only those blocks, so it is dead w.r.t. the returned tensor and is
    # skipped here.  When CGConv is reinstated, the linear-chain fold in
    # prepare_kernel_params and the pool-before-conv commutation must be undone.
    del subgraphs

    out = fused_forward(x2, kparams["wb"], B)          # (B, NUM_CLASSES)
    return out.reshape(B, -1)


# ---------------------------------------------------------------------------
# Parameter construction (per-layer, matching the module) + kernel-side fold:
#   scale = gamma * rsqrt(var + eps); shift = beta - mean * scale
#   Wfold = (map_w * scale) @ lin_w      (4, 4)
#   bfold = shift @ lin_w + lin_b        (1, 4)
#   packed into one (C+1, F) slab -> a single tiny params DMA.
#
# NOTE on weight import: real PyTorch checkpoints store Conv2d weight as
# (Cout, Cin, 1, 1) and Linear weight as (out, in); this script builds them
# directly as (Cin, Cout) / (in, out), so importing a checkpoint would need
# the corresponding transposes.
# ---------------------------------------------------------------------------
def make_params(key):
    ks = jax.random.split(key, 12)

    def bn_stats(kg, kb, km, kv, c):
        gamma = 1.0 + 0.1 * jax.random.normal(kg, (1, c), jnp.float32)
        beta = 0.1 * jax.random.normal(kb, (1, c), jnp.float32)
        mean = 0.1 * jax.random.normal(km, (1, c), jnp.float32)
        var = 0.5 + jnp.abs(jax.random.normal(kv, (1, c), jnp.float32))
        return gamma, beta, mean, var

    return {
        # source_mapping: Conv2d(SRC, N_DIM, 1, bias=False) weight as (Cin, Cout)
        "map_w": 0.1 * jax.random.normal(
            ks[0], (SRC_INPUT_DIMENSION, N_DIMENSION), jnp.float32),
        "map_bn": bn_stats(ks[1], ks[2], ks[3], ks[4], N_DIMENSION),
        # source_graph_mapping params exist in the module but feed only the
        # missing CGConvBlocks; kept here for parity, unused at runtime.
        "gmap_w": 0.1 * jax.random.normal(
            ks[5], (SRC_INPUT_DIMENSION, N_DIMENSION), jnp.float32),
        "gmap_bn": bn_stats(ks[6], ks[7], ks[8], ks[9], N_DIMENSION),
        # Linear(100, 4): weight stored as (in, out), bias (1, out)
        "lin_w": 0.1 * jax.random.normal(ks[10], (N_DIMENSION, NUM_CLASSES), jnp.float32),
        "lin_b": 0.1 * jax.random.normal(ks[11], (1, NUM_CLASSES), jnp.float32),
    }


def prepare_kernel_params(params):
    gamma, beta, mean, var = params["map_bn"]
    scale = gamma * jax.lax.rsqrt(var + 1e-5)              # (1, N_DIM)
    shift = beta - mean * scale                            # (1, N_DIM)
    wmap = params["map_w"] * scale                         # BN scale folded in

    # Fold the (currently fully linear) conv1x1 -> BN -> pool -> Linear chain.
    # MUST be undone once the CGConvBlocks exist between mapping and pool.
    wfold = wmap @ params["lin_w"]                         # (Cin, F) = (4, 4)
    bfold = shift @ params["lin_w"] + params["lin_b"]      # (1, F)
    wb = jnp.concatenate([wfold, bfold], axis=0)           # (Cin+1, F) = (5, 4)
    return {"wb": wb}


if __name__ == "__main__":
    key = jax.random.PRNGKey(0)
    k_data, k_sub, k_params = jax.random.split(key, 3)

    B, H, W = 2, 9, 9  # 9x9 patches as implied by D_Res_3d_CNN._get_layer_size
    data = jax.random.normal(k_data, (B, SRC_INPUT_DIMENSION, H, W), jnp.float32)
    subgraphs = jax.random.normal(
        k_sub, (B, SRC_INPUT_DIMENSION, SUPERPIXEL_COUNT), jnp.float32
    )

    kparams = prepare_kernel_params(make_params(k_params))

    fwd = jax.jit(network_forward)
    out = jax.block_until_ready(fwd(kparams, data, subgraphs))
    assert out.shape == (B, NUM_CLASSES), out.shape
    print("KERNEL_OK")
</pallas_src>

<mosaic_0001>
module attributes {stable_mosaic.version = 11 : i64} {
  func.func @_fused_forward_kernel(%arg0: memref<8x81xf32, #tpu.memory_space<vmem>>, %arg1: memref<5x4xf32, #tpu.memory_space<vmem>>, %arg2: memref<2x4xf32, #tpu.memory_space<vmem>>) attributes {dimension_semantics = [], scalar_prefetch = 0 : i64, scratch_operands = 0 : i64, tpu.core_type = #tpu.core_type<tc>} {
    %c0 = arith.constant 0 : index
    %c0_0 = arith.constant 0 : index
    %0 = vector.load %arg0[%c0, %c0_0] : memref<8x81xf32, #tpu.memory_space<vmem>>, vector<8x81xf32>
    %cst = arith.constant dense<0.000000e+00> : vector<8xf32>
    %1 = vector.multi_reduction <add>, %0, %cst [1] : vector<8x81xf32> to vector<8xf32>
    %2 = vector.shape_cast %1 : vector<8xf32> to vector<8x1xf32>
    %cst_1 = arith.constant 8.100000e+01 : f32
    %3 = vector.broadcast %cst_1 : f32 to vector<8x1xf32>
    %4 = arith.divf %2, %3 : vector<8x1xf32>
    %c0_2 = arith.constant 0 : index
    %c0_3 = arith.constant 0 : index
    %5 = vector.load %arg1[%c0_2, %c0_3] : memref<5x4xf32, #tpu.memory_space<vmem>>, vector<5x4xf32>
    %6 = vector.extract_strided_slice %5 {offsets = [4, 0], sizes = [1, 4], strides = [1, 1]} : vector<5x4xf32> to vector<1x4xf32>
    %7 = vector.extract_strided_slice %4 {offsets = [0, 0], sizes = [1, 1], strides = [1, 1]} : vector<8x1xf32> to vector<1x1xf32>
    %8 = vector.extract_strided_slice %5 {offsets = [0, 0], sizes = [1, 4], strides = [1, 1]} : vector<5x4xf32> to vector<1x4xf32>
    %9 = vector.broadcast %7 : vector<1x1xf32> to vector<1x4xf32>
    %10 = arith.mulf %9, %8 : vector<1x4xf32>
    %11 = arith.addf %6, %10 : vector<1x4xf32>
    %12 = vector.extract_strided_slice %4 {offsets = [1, 0], sizes = [1, 1], strides = [1, 1]} : vector<8x1xf32> to vector<1x1xf32>
    %13 = vector.extract_strided_slice %5 {offsets = [1, 0], sizes = [1, 4], strides = [1, 1]} : vector<5x4xf32> to vector<1x4xf32>
    %14 = vector.broadcast %12 : vector<1x1xf32> to vector<1x4xf32>
    %15 = arith.mulf %14, %13 : vector<1x4xf32>
    %16 = arith.addf %11, %15 : vector<1x4xf32>
    %17 = vector.extract_strided_slice %4 {offsets = [2, 0], sizes = [1, 1], strides = [1, 1]} : vector<8x1xf32> to vector<1x1xf32>
    %18 = vector.extract_strided_slice %5 {offsets = [2, 0], sizes = [1, 4], strides = [1, 1]} : vector<5x4xf32> to vector<1x4xf32>
    %19 = vector.broadcast %17 : vector<1x1xf32> to vector<1x4xf32>
    %20 = arith.mulf %19, %18 : vector<1x4xf32>
    %21 = arith.addf %16, %20 : vector<1x4xf32>
    %22 = vector.extract_strided_slice %4 {offsets = [3, 0], sizes = [1, 1], strides = [1, 1]} : vector<8x1xf32> to vector<1x1xf32>
    %23 = vector.extract_strided_slice %5 {offsets = [3, 0], sizes = [1, 4], strides = [1, 1]} : vector<5x4xf32> to vector<1x4xf32>
    %24 = vector.broadcast %22 : vector<1x1xf32> to vector<1x4xf32>
    %25 = arith.mulf %24, %23 : vector<1x4xf32>
    %26 = arith.addf %21, %25 : vector<1x4xf32>
    %c0_4 = arith.constant 0 : index
    %c0_5 = arith.constant 0 : index
    %27 = vector.load %arg2[%c0_4, %c0_5] : memref<2x4xf32, #tpu.memory_space<vmem>>, vector<1x4xf32>
    tpu.vector_store %arg2[%c0_4, %c0_5], %26 {strides = array<i32>} : memref<2x4xf32, #tpu.memory_space<vmem>>, vector<1x4xf32>,
    %28 = vector.extract_strided_slice %4 {offsets = [4, 0], sizes = [1, 1], strides = [1, 1]} : vector<8x1xf32> to vector<1x1xf32>
    %29 = vector.extract_strided_slice %5 {offsets = [0, 0], sizes = [1, 4], strides = [1, 1]} : vector<5x4xf32> to vector<1x4xf32>
    %30 = vector.broadcast %28 : vector<1x1xf32> to vector<1x4xf32>
    %31 = arith.mulf %30, %29 : vector<1x4xf32>
    %32 = arith.addf %6, %31 : vector<1x4xf32>
    %33 = vector.extract_strided_slice %4 {offsets = [5, 0], sizes = [1, 1], strides = [1, 1]} : vector<8x1xf32> to vector<1x1xf32>
    %34 = vector.extract_strided_slice %5 {offsets = [1, 0], sizes = [1, 4], strides = [1, 1]} : vector<5x4xf32> to vector<1x4xf32>
    %35 = vector.broadcast %33 : vector<1x1xf32> to vector<1x4xf32>
    %36 = arith.mulf %35, %34 : vector<1x4xf32>
    %37 = arith.addf %32, %36 : vector<1x4xf32>
    %38 = vector.extract_strided_slice %4 {offsets = [6, 0], sizes = [1, 1], strides = [1, 1]} : vector<8x1xf32> to vector<1x1xf32>
    %39 = vector.extract_strided_slice %5 {offsets = [2, 0], sizes = [1, 4], strides = [1, 1]} : vector<5x4xf32> to vector<1x4xf32>
    %40 = vector.broadcast %38 : vector<1x1xf32> to vector<1x4xf32>
    %41 = arith.mulf %40, %39 : vector<1x4xf32>
    %42 = arith.addf %37, %41 : vector<1x4xf32>
    %43 = vector.extract_strided_slice %4 {offsets = [7, 0], sizes = [1, 1], strides = [1, 1]} : vector<8x1xf32> to vector<1x1xf32>
    %44 = vector.extract_strided_slice %5 {offsets = [3, 0], sizes = [1, 4], strides = [1, 1]} : vector<5x4xf32> to vector<1x4xf32>
    %45 = vector.broadcast %43 : vector<1x1xf32> to vector<1x4xf32>
    %46 = arith.mulf %45, %44 : vector<1x4xf32>
    %47 = arith.addf %42, %46 : vector<1x4xf32>
    %c1 = arith.constant 1 : index
    %c0_6 = arith.constant 0 : index
    %48 = vector.load %arg2[%c1, %c0_6] : memref<2x4xf32, #tpu.memory_space<vmem>>, vector<1x4xf32>
    tpu.vector_store %arg2[%c1, %c0_6], %47 {strides = array<i32>} : memref<2x4xf32, #tpu.memory_space<vmem>>, vector<1x4xf32>,
    return
  }
}

</mosaic_0001>

<bundles_post_ra>
// kernel: network_forward.1
= control target key start
LH: loop header
LB: loop body
LE: loop exit
PB: predicated region body
PF: predicated region fallthrough
CT: control target
= control target key end

     0   :  { %vm13_vm0 = vcmask 662528   ;;  %s114_s0 = inlined_call_operand.vmem [shape: f32[8,81], index: 0, kind: input, shape index: {}]   ;;  %s115_s1 = inlined_call_operand.vmem [shape: f32[5,4], index: 1, kind: input, shape index: {}]   ;;  %s116_s2 = inlined_call_operand.hbm [shape: f32[2,4], index: 2, kind: output, shape index: {}]  }
   0x1   :  { %v12_v0 = vld [vmem:[%s114_s0] sm:$0xff] }
   0x2   :  { %7 = vsyncpa [#allocation3], 0  ;;  %v14_v1 = vsel %vm13_vm0, %v12_v0, 0.0  ;;  %v19_v2 = vld [vmem:[%s115_s1] sm:$0x1f]  ;;  %vm34_vm1 = vcmask 28676  }
   0x3   :  { %15 = vadd.xlane.f32.xlu0 %v14_v1  ;;  %v37_v3 = vrot.slane %v19_v2, 4  ;;  %s89_s0 = smov [#allocation2]  }
   0x4   :  { %s58_s13 = sshll.u32 %s89_s0, 4  ;;  %s59_s13 = int_to_ptr.vmem [resolvable:$true] %s58_s13 }
   0x5   :  { %s67_s1 = scalar_lea.vmem %s59_s13, 32  ;;  %p72_p1 = scmp.lt.s32.totalorder %s59_s13, %s59_s13 }
   0x6   :  { %p68_p0 = scmp.ne.s32.totalorder %s59_s13, %s67_s1  ;;  %p73_p2 = scmp.lt.s32.totalorder %s67_s1, %s67_s1 }
   0x8   :  { %p74_p3 = por %p73_p2, %p72_p1 }
   0xa   :  { %p75_p4 = pnand %p74_p3, %p68_p0 }
  0x8c   :  { %v16_v4 = vpop.xlane.xlu0 %15 }
  0x8d   :  { %v18_v5 = vmul.f32 0.012345679, %v16_v4 }
  0x8f   :  { %v20_v6 = vmul.f32 %v19_v2, %v18_v5  ;;  %v39_v7 = vmul.f32 %v37_v3, %v18_v5 }
  0x91   :  { %v22_v8 = vrot.slane %v20_v6, 4  ;;  %v40_v9 = vadd.f32 %v39_v7, %v19_v2  ;;  %v42_v10 = vrot.slane %v39_v7, 1  ;;  %v25_v12 = vrot.slane %v20_v6, 5 }
  0x92   :  { %v45_v14 = vrot.slane %v39_v7, 2  ;;  %v28_v16 = vrot.slane %v20_v6, 6  ;;  %v48_v18 = vrot.slane %v39_v7, 3  ;;  %v31_v20 = vrot.slane %v20_v6, 7 }
  0x93   :  { %v24_v11 = vadd.f32 %v22_v8, %v19_v2  ;;  %v44_v13 = vadd.f32 %v42_v10, %v40_v9 }
  0x95   :  { %v27_v15 = vadd.f32 %v25_v12, %v24_v11  ;;  %v47_v17 = vadd.f32 %v45_v14, %v44_v13 }
  0x97   :  { %v30_v19 = vadd.f32 %v28_v16, %v27_v15  ;;  %v50_v21 = vadd.f32 %v48_v18, %v47_v17 }
  0x99   :  { %v33_v22 = vadd.f32 %v31_v20, %v30_v19  ;;  %51 = vst.msk [vmem:[#allocation2 - $0x3] sm:$0x10] %vm34_vm1, %v50_v21 }
  0x9b   :  { %35 = vst.msk [vmem:[#allocation2 - $0x4] sm:$0x10] %vm34_vm1, %v33_v22 }
  0x9c   :  { %78 = shalt.err (!%p75_p4)
}
  0x9d   :  { %61 = dma.vmem_to_hbm [thread:$0]  %s59_s13, 32, %s116_s2, [#allocation3]  }
  0x9e   :  { %87 = dma.done.wait [#allocation3], 32  }
  0x9f   :  { %88 = vsyncadd [#allocation3], 4294967264 }
  0xa0   :  { %65 = vsyncpa [#allocation3], 1 }

</bundles_post_ra>
